<compile_context>
chip_gen: v7x
topology: tpu7x:2x2x1
jax: 0.10.0
libtpu: 0.0.40
codegen_flags: <defaults>
</compile_context>

<pallas_src>
import math
import functools

import jax
import jax.numpy as jnp
from jax import lax
from jax.experimental import pallas as pl
from jax.experimental.pallas import tpu as pltpu


# ----------------------------- kernel helpers -----------------------------

def _layernorm(x, gamma, beta, eps=1e-5):
    mu = jnp.mean(x, axis=-1, keepdims=True)
    var = jnp.mean((x - mu) ** 2, axis=-1, keepdims=True)
    return (x - mu) * lax.rsqrt(var + eps) * gamma + beta


def _leaky_relu(x, slope=0.01):  # nn.LeakyReLU default negative_slope
    return jnp.where(x >= 0, x, slope * x)


def _mask_bias(T, attend_mode, window, neg):
    """Additive attention bias built in-kernel from iota (already divided by scale)."""
    row = lax.broadcasted_iota(jnp.int32, (T, T), 0)
    col = lax.broadcasted_iota(jnp.int32, (T, T), 1)
    bias = jnp.zeros((T, T), jnp.float32)
    if attend_mode == 'only_attend_front':
        bias = bias - jnp.where(col > row, neg, 0.0)            # triu(1)
    elif attend_mode == 'only_attend_back':
        bias = bias - jnp.where(col <= row + 1, neg, 0.0)        # tril(1), faithful to PyTorch
    elif attend_mode == 'not_attend_self':
        bias = bias - jnp.where(col == row, neg, 0.0)            # eye
    if window > 0:
        # faithful to the PyTorch expression: triu(w+1) + tril(w+1)
        wmask = (jnp.where(col - row >= window + 1, 1.0, 0.0)
                 + jnp.where(col - row <= window + 1, 1.0, 0.0))
        bias = bias - wmask * neg
    return bias


# --------------------------- fused encoder-layer kernel ---------------------------
# y   = LayerNorm(x + Wo(MHA(x)))                              (ResidualBlock(MultiHeadAttention))
# out = LayerNorm(y*g + FF(y)*(1-g)),  g = sigmoid(gate(y))    (HighwayBlock(FeedForward))

def _encoder_layer_kernel(x_ref,
                          wqkv_ref, bqkv_ref, wo_ref, bo_ref, ln1g_ref, ln1b_ref,
                          wg1_ref, bg1_ref, wg2_ref, bg2_ref,
                          w1_ref, b1_ref, w2_ref, b2_ref, ln2g_ref, ln2b_ref,
                          o_ref, *, n_heads, inv_scale, attend_mode, window):
    Bb, T, D = x_ref.shape
    N = n_heads
    Dh = D // N
    R = Bb * T
    mxu = wqkv_ref.dtype                                # weights pre-cast on the host

    x = x_ref[...].astype(jnp.float32).reshape(R, D)    # tokens as rows

    def linear(a, w_ref, b_ref):
        return (jnp.dot(a.astype(mxu), w_ref[...],
                        preferred_element_type=jnp.float32) + b_ref[...])

    # ---- fused QKV projection (1/sqrt(d_key) already folded into the q columns) ----
    qkv = linear(x, wqkv_ref, bqkv_ref)                 # (R, 3D) f32

    # additive mask bias; skipped entirely in the unmasked case (all zeros).
    if attend_mode != 'full' or window > 0:
        bias = _mask_bias(T, attend_mode, window, 1e9 * inv_scale)   # (T, T)
    else:
        bias = None
    thr = -5e8 * inv_scale

    # ---- multi-head self-attention, head-batched contractions per batch row ----
    attn_rows = []
    for bi in range(Bb):                                # trip count == block_b (default 1)
        qkv_t = qkv[bi * T:(bi + 1) * T, :].T           # (3D, T): one 2-D minor transpose
        q_t = qkv_t[:D].reshape(N, Dh, T)               # major-dim split: free reshapes
        k_t = qkv_t[D:2 * D].reshape(N, Dh, T)
        v_t = qkv_t[2 * D:].reshape(N, Dh, T)
        qh = jnp.transpose(q_t, (0, 2, 1))              # (N, T, Dh): last-two-dims swap

        logits = jnp.einsum('nqd,ndk->nqk',
                            qh.astype(mxu), k_t.astype(mxu),
                            preferred_element_type=jnp.float32)      # (N, T, T)
        if bias is not None:
            logits = logits + bias[None]

        m = jnp.max(logits, axis=-1, keepdims=True)
        e = jnp.exp(logits - m)
        denom = jnp.sum(e, axis=-1, keepdims=True)
        # reference gate "all dot-products <= -5e8" is equivalent to "row max <= thr".
        keep = (m > thr).astype(jnp.float32)
        probs = e * (pl.reciprocal(denom, approx=True) * keep)
        # TODO(synk): attention dropout on probs is identity (eval mode).

        ctx_t = jnp.einsum('ndk,nqk->ndq',
                           v_t.astype(mxu), probs.astype(mxu),
                           preferred_element_type=jnp.float32)       # (N, Dh, T)
        attn_rows.append(ctx_t.reshape(D, T).T)                       # (T, D), lane-dense
    attn = attn_rows[0] if Bb == 1 else jnp.concatenate(attn_rows, axis=0)   # (R, D)

    # ResidualBlock: LayerNorm(x + dropout(Wo(attn))); dropout is identity in eval.
    y = _layernorm(x + linear(attn, wo_ref, bo_ref), ln1g_ref[...], ln1b_ref[...])

    # ---- highway feed-forward ----
    # gate = FeedForward(D, 1): Linear(D->1) -> LeakyReLU -> Linear(1->D) -> sigmoid
    hg = _leaky_relu(jnp.sum(y * wg1_ref[...], axis=-1, keepdims=True) + bg1_ref[...])
    g = jax.nn.sigmoid(hg * wg2_ref[...] + bg2_ref[...])              # (R, D)

    # main FeedForward(D, H): Linear(D->H) -> LeakyReLU -> Linear(H->D)
    h1 = _leaky_relu(linear(y, w1_ref, b1_ref))
    ff = linear(h1, w2_ref, b2_ref)
    # TODO(synk): dropout on the FF branch is identity (eval mode).

    out = _layernorm(y * g + ff * (1.0 - g), ln2g_ref[...], ln2b_ref[...])
    o_ref[...] = out.reshape(Bb, T, D).astype(o_ref.dtype)             # single full-width store


# ------------------------------- wrapper ----------------------------------

def transformer_encoder_layer(x, p, *, n_heads, attend_mode='full', window=-1,
                              block_b=1, mxu_dtype=jnp.float32):
    """Forward pass of TransformerEncoderLayer (eval mode, mask_tar=None).

    block_b: batch rows per grid step. Use 1 (grid=(B,), 'parallel') to keep both v7x
    TensorCores busy; use B (grid=1) on single-TC v5e/v6e to maximize the MXU M dim.
    """
    # TODO(synk): per-batch mask_tar not exercised (mask=None path only).
    B, T, D = x.shape
    assert D % n_heads == 0 and B % block_b == 0
    assert attend_mode in ('full', 'only_attend_front', 'not_attend_self', 'only_attend_back')
    inv_scale = 1.0 / math.sqrt(D)  # Attention was built with d_key = d_tar
    Hff = p['w1'].shape[1]

    # Fuse Q/K/V; fold 1/sqrt(d_key) into q's columns before any dtype cast.
    wqkv = jnp.concatenate([p['wq'] * inv_scale, p['wk'], p['wv']], axis=1)   # (D, 3D)
    bqkv = jnp.concatenate([p['bq'] * inv_scale, p['bk'], p['bv']], axis=1)   # (1, 3D)

    to_mxu = lambda w: w.astype(mxu_dtype)   # matmul weights only; biases/LN/gate stay f32
    weights = (to_mxu(wqkv), bqkv, to_mxu(p['wo']), p['bo'], p['ln1_g'], p['ln1_b'],
               p['wg1'], p['bg1'], p['wg2'], p['bg2'],
               to_mxu(p['w1']), p['b1'], to_mxu(p['w2']), p['b2'],
               p['ln2_g'], p['ln2_b'])

    x_spec = pl.BlockSpec((block_b, T, D), lambda b: (b, 0, 0))
    # Grid-invariant weights: whole-array VMEM residence, no double-buffering.
    w_spec = pl.BlockSpec(memory_space=pltpu.MemorySpace.VMEM)

    kernel = functools.partial(_encoder_layer_kernel, n_heads=n_heads,
                               inv_scale=inv_scale, attend_mode=attend_mode, window=window)

    flops = (2 * B * T * D * (3 * D)        # fused QKV projection
             + 4 * B * T * T * D            # scores + probs@V
             + 2 * B * T * D * D            # Wo
             + 4 * B * T * D * Hff          # FF linear1 + linear2
             + 4 * B * T * D)               # highway gate
    transcendentals = B * n_heads * T * T + B * T * D + 4 * B * T
    bytes_accessed = (2 * B * T * D) * 4 + sum(int(w.size) * w.dtype.itemsize for w in weights)

    return pl.pallas_call(
        kernel,
        out_shape=jax.ShapeDtypeStruct((B, T, D), x.dtype),
        grid=(B // block_b,),
        in_specs=[x_spec] + [w_spec] * len(weights),
        out_specs=x_spec,
        compiler_params=pltpu.CompilerParams(
            dimension_semantics=("parallel",),          # shards grid across TCs on v7x
            vmem_limit_bytes=48 * 1024 * 1024),          # headroom under v7x's 64 MiB
        cost_estimate=pl.CostEstimate(flops=flops, transcendentals=transcendentals,
                                      bytes_accessed=bytes_accessed),
    )(x, *weights)


# --------------------------- parameter init --------------------------------

def init_params(key, d_tar, d_hidden):
    ks = jax.random.split(key, 12)

    def lin(k, fan_in, fan_out):  # PyTorch-Linear-style uniform init; returns W^T (in,out)
        bound = 1.0 / math.sqrt(fan_in)
        kw, kb = jax.random.split(k)
        w = jax.random.uniform(kw, (fan_in, fan_out), jnp.float32, -bound, bound)
        b = jax.random.uniform(kb, (1, fan_out), jnp.float32, -bound, bound)
        return w, b

    p = {}
    p['wq'], p['bq'] = lin(ks[0], d_tar, d_tar)
    p['wk'], p['bk'] = lin(ks[1], d_tar, d_tar)
    p['wv'], p['bv'] = lin(ks[2], d_tar, d_tar)
    p['wo'], p['bo'] = lin(ks[3], d_tar, d_tar)
    p['ln1_g'] = jnp.ones((1, d_tar), jnp.float32)
    p['ln1_b'] = jnp.zeros((1, d_tar), jnp.float32)

    # highway gate = FeedForward(d_tar, 1)
    b1 = 1.0 / math.sqrt(d_tar)
    p['wg1'] = jax.random.uniform(ks[4], (1, d_tar), jnp.float32, -b1, b1)    # Linear(D->1) weight row
    p['bg1'] = jax.random.uniform(ks[5], (1, 1), jnp.float32, -b1, b1)
    p['wg2'] = jax.random.uniform(ks[6], (1, d_tar), jnp.float32, -1.0, 1.0)  # Linear(1->D) weight (transposed)
    p['bg2'] = jax.random.uniform(ks[7], (1, d_tar), jnp.float32, -1.0, 1.0)

    # main FeedForward(d_tar, d_hidden)
    p['w1'], p['b1'] = lin(ks[8], d_tar, d_hidden)
    p['w2'], p['b2'] = lin(ks[9], d_hidden, d_tar)
    p['ln2_g'] = jnp.ones((1, d_tar), jnp.float32)
    p['ln2_b'] = jnp.zeros((1, d_tar), jnp.float32)
    return p


# ----------------------------- pure-JAX reference ---------------------------

def _attention_bias(T, attend_mode, window):
    ones = jnp.ones((T, T), jnp.float32)
    bias = jnp.zeros((T, T), jnp.float32)
    if attend_mode == 'only_attend_front':
        bias = bias - jnp.triu(ones, 1) * 1e9
    elif attend_mode == 'only_attend_back':
        bias = bias - jnp.tril(ones, 1) * 1e9
    elif attend_mode == 'not_attend_self':
        bias = bias - jnp.eye(T, dtype=jnp.float32) * 1e9
    if window > 0:
        bias = bias - (jnp.triu(ones, window + 1) + jnp.tril(ones, window + 1)) * 1e9
    return bias


def reference_forward(x, p, *, n_heads, attend_mode='full', window=-1):
    B, T, D = x.shape
    Dh = D // n_heads
    scale = math.sqrt(D)
    bias = _attention_bias(T, attend_mode, window)

    q = x @ p['wq'] + p['bq']
    k = x @ p['wk'] + p['bk']
    v = x @ p['wv'] + p['bv']
    split = lambda a: a.reshape(B, T, n_heads, Dh).transpose(0, 2, 1, 3)
    qh, kh, vh = split(q), split(k), split(v)
    dots = jnp.einsum('bntd,bnsd->bnts', qh, kh) + bias
    probs = jax.nn.softmax(dots / scale, axis=-1)
    keep = (jnp.sum(dots <= -5e8, axis=-1, keepdims=True) < T).astype(jnp.float32)
    probs = probs * keep
    attn = jnp.einsum('bnts,bnsd->bntd', probs, vh).transpose(0, 2, 1, 3).reshape(B, T, D)
    y = x + attn @ p['wo'] + p['bo']
    mu = y.mean(-1, keepdims=True); var = ((y - mu) ** 2).mean(-1, keepdims=True)
    y = (y - mu) / jnp.sqrt(var + 1e-5) * p['ln1_g'] + p['ln1_b']

    hg = jnp.sum(y * p['wg1'], axis=-1, keepdims=True) + p['bg1'][0, 0]
    hg = jnp.where(hg >= 0, hg, 0.01 * hg)
    g = jax.nn.sigmoid(hg * p['wg2'] + p['bg2'])
    h = y @ p['w1'] + p['b1']
    h = jnp.where(h >= 0, h, 0.01 * h)
    ff = h @ p['w2'] + p['b2']
    z = y * g + ff * (1.0 - g)
    mu = z.mean(-1, keepdims=True); var = ((z - mu) ** 2).mean(-1, keepdims=True)
    return (z - mu) / jnp.sqrt(var + 1e-5) * p['ln2_g'] + p['ln2_b']


# --------------------------------- main -------------------------------------

if __name__ == "__main__":
    B, T, D, N, H = 2, 8, 32, 4, 64   # batch, seq, d_tar, n_heads, d_hidden
    key = jax.random.PRNGKey(0)
    kx, kp = jax.random.split(key)
    x = jax.random.normal(kx, (B, T, D), jnp.float32)
    params = init_params(kp, D, H)

    # causal mask, f32 MXU inputs, block_b=1 (grid=(B,), 'parallel' — v7x style)
    ref = reference_forward(x, params, n_heads=N, attend_mode='only_attend_front', window=-1)
    out = transformer_encoder_layer(x, params, n_heads=N,
                                    attend_mode='only_attend_front', window=-1)
    out = jax.block_until_ready(out)
    assert out.shape == (B, T, D)
    assert jnp.allclose(out, ref, rtol=5e-3, atol=5e-3), "mismatch vs. reference (causal, f32)"

    # unmasked 'full' mode (bias add skipped), block_b=B (grid=1 — v5e/v6e big-block style)
    ref_full = reference_forward(x, params, n_heads=N, attend_mode='full', window=-1)
    out_full = transformer_encoder_layer(x, params, n_heads=N, attend_mode='full',
                                         window=-1, block_b=B)
    out_full = jax.block_until_ready(out_full)
    assert jnp.allclose(out_full, ref_full, rtol=5e-3, atol=5e-3), "mismatch vs. reference (full)"

    # bf16 MXU-input path (weights pre-cast on host; accumulation / softmax / LN stay f32)
    out_bf16 = transformer_encoder_layer(x, params, n_heads=N,
                                         attend_mode='only_attend_front', window=-1,
                                         mxu_dtype=jnp.bfloat16)
    out_bf16 = jax.block_until_ready(out_bf16)
    assert jnp.allclose(out_bf16, ref, rtol=5e-2, atol=5e-2), "mismatch vs. reference (bf16 MXU)"

    print("KERNEL_OK")
</pallas_src>

<mosaic_0001>
module attributes {stable_mosaic.version = 11 : i64} {
  func.func @_encoder_layer_kernel(%arg0: i32, %arg1: memref<1x8x32xf32, #tpu.memory_space<vmem>>, %arg2: memref<32x96xf32, #tpu.memory_space<vmem>>, %arg3: memref<1x96xf32, #tpu.memory_space<vmem>>, %arg4: memref<32x32xf32, #tpu.memory_space<vmem>>, %arg5: memref<1x32xf32, #tpu.memory_space<vmem>>, %arg6: memref<1x32xf32, #tpu.memory_space<vmem>>, %arg7: memref<1x32xf32, #tpu.memory_space<vmem>>, %arg8: memref<1x32xf32, #tpu.memory_space<vmem>>, %arg9: memref<1x1xf32, #tpu.memory_space<vmem>>, %arg10: memref<1x32xf32, #tpu.memory_space<vmem>>, %arg11: memref<1x32xf32, #tpu.memory_space<vmem>>, %arg12: memref<32x64xf32, #tpu.memory_space<vmem>>, %arg13: memref<1x64xf32, #tpu.memory_space<vmem>>, %arg14: memref<64x32xf32, #tpu.memory_space<vmem>>, %arg15: memref<1x32xf32, #tpu.memory_space<vmem>>, %arg16: memref<1x32xf32, #tpu.memory_space<vmem>>, %arg17: memref<1x32xf32, #tpu.memory_space<vmem>>, %arg18: memref<1x8x32xf32, #tpu.memory_space<vmem>>) attributes {dimension_semantics = [#tpu.dimension_semantics<parallel>], iteration_bounds = array<i64: 2>, scalar_prefetch = 0 : i64, scratch_operands = 0 : i64, tpu.core_type = #tpu.core_type<tc>, window_params = [{transform_indices = @transform_0, window_bounds = array<i64: 1, 8, 32>}, {pipeline_mode = #tpu.pipeline_mode<synchronous>, transform_indices = @transform_1, window_bounds = array<i64: 32, 96>}, {pipeline_mode = #tpu.pipeline_mode<synchronous>, transform_indices = @transform_2, window_bounds = array<i64: 1, 96>}, {pipeline_mode = #tpu.pipeline_mode<synchronous>, transform_indices = @transform_3, window_bounds = array<i64: 32, 32>}, {pipeline_mode = #tpu.pipeline_mode<synchronous>, transform_indices = @transform_4, window_bounds = array<i64: 1, 32>}, {pipeline_mode = #tpu.pipeline_mode<synchronous>, transform_indices = @transform_5, window_bounds = array<i64: 1, 32>}, {pipeline_mode = #tpu.pipeline_mode<synchronous>, transform_indices = @transform_6, window_bounds = array<i64: 1, 32>}, {pipeline_mode = #tpu.pipeline_mode<synchronous>, transform_indices = @transform_7, window_bounds = array<i64: 1, 32>}, {pipeline_mode = #tpu.pipeline_mode<synchronous>, transform_indices = @transform_8, window_bounds = array<i64: 1, 1>}, {pipeline_mode = #tpu.pipeline_mode<synchronous>, transform_indices = @transform_9, window_bounds = array<i64: 1, 32>}, {pipeline_mode = #tpu.pipeline_mode<synchronous>, transform_indices = @transform_10, window_bounds = array<i64: 1, 32>}, {pipeline_mode = #tpu.pipeline_mode<synchronous>, transform_indices = @transform_11, window_bounds = array<i64: 32, 64>}, {pipeline_mode = #tpu.pipeline_mode<synchronous>, transform_indices = @transform_12, window_bounds = array<i64: 1, 64>}, {pipeline_mode = #tpu.pipeline_mode<synchronous>, transform_indices = @transform_13, window_bounds = array<i64: 64, 32>}, {pipeline_mode = #tpu.pipeline_mode<synchronous>, transform_indices = @transform_14, window_bounds = array<i64: 1, 32>}, {pipeline_mode = #tpu.pipeline_mode<synchronous>, transform_indices = @transform_15, window_bounds = array<i64: 1, 32>}, {pipeline_mode = #tpu.pipeline_mode<synchronous>, transform_indices = @transform_16, window_bounds = array<i64: 1, 32>}, {transform_indices = @transform_17, window_bounds = array<i64: 1, 8, 32>}]} {
    %c0 = arith.constant 0 : index
    %c0_0 = arith.constant 0 : index
    %c0_1 = arith.constant 0 : index
    %0 = vector.load %arg1[%c0, %c0_0, %c0_1] : memref<1x8x32xf32, #tpu.memory_space<vmem>>, vector<1x8x32xf32>
    %1 = vector.shape_cast %0 : vector<1x8x32xf32> to vector<8x32xf32>
    %c0_2 = arith.constant 0 : index
    %c0_3 = arith.constant 0 : index
    %2 = vector.load %arg2[%c0_2, %c0_3] : memref<32x96xf32, #tpu.memory_space<vmem>>, vector<32x96xf32>
    %cst = arith.constant dense<0.000000e+00> : vector<8x96xf32>
    %3 = tpu.matmul %1, %2, %cst {dimension_numbers = #tpu.dot_dimension_numbers<[1], [0], [0], [1], [0, 0, 1, 1], [], []>} : vector<8x32xf32>, vector<32x96xf32>, vector<8x96xf32> -> vector<8x96xf32>
    %c0_4 = arith.constant 0 : index
    %c0_5 = arith.constant 0 : index
    %4 = vector.load %arg3[%c0_4, %c0_5] : memref<1x96xf32, #tpu.memory_space<vmem>>, vector<1x96xf32>
    %5 = vector.broadcast %4 : vector<1x96xf32> to vector<8x96xf32>
    %6 = arith.addf %3, %5 : vector<8x96xf32>
    %7 = tpu.iota {dimensions = array<i32: 0>} : vector<8x8xi32>
    %8 = tpu.iota {dimensions = array<i32: 1>} : vector<8x8xi32>
    %cst_6 = arith.constant 0.000000e+00 : f32
    %9 = vector.broadcast %cst_6 : f32 to vector<8x8xf32>
    %10 = arith.cmpi sgt, %8, %7 : vector<8x8xi32>
    %cst_7 = arith.constant 0x4D28965F : f32
    %cst_8 = arith.constant 0.000000e+00 : f32
    %11 = vector.broadcast %cst_7 : f32 to vector<8x8xf32>
    %12 = vector.broadcast %cst_8 : f32 to vector<8x8xf32>
    %13 = arith.select %10, %11, %12 : vector<8x8xi1>, vector<8x8xf32>
    %14 = arith.subf %9, %13 : vector<8x8xf32>
    %15 = tpu.transpose %6, [1, 0] : vector<8x96xf32> -> vector<96x8xf32>
    %16 = vector.extract_strided_slice %15 {offsets = [0, 0], sizes = [32, 8], strides = [1, 1]} : vector<96x8xf32> to vector<32x8xf32>
    %17 = vector.shape_cast %16 : vector<32x8xf32> to vector<4x8x8xf32>
    %18 = vector.extract_strided_slice %15 {offsets = [32, 0], sizes = [32, 8], strides = [1, 1]} : vector<96x8xf32> to vector<32x8xf32>
    %19 = vector.shape_cast %18 : vector<32x8xf32> to vector<4x8x8xf32>
    %20 = vector.extract_strided_slice %15 {offsets = [64, 0], sizes = [32, 8], strides = [1, 1]} : vector<96x8xf32> to vector<32x8xf32>
    %21 = vector.shape_cast %20 : vector<32x8xf32> to vector<4x8x8xf32>
    %22 = tpu.transpose %17, [0, 2, 1] : vector<4x8x8xf32> -> vector<4x8x8xf32>
    "tpu.trace_start"() <{level = 10 : i32, message = "nqd,ndk->nqk"}> : () -> ()
    %cst_9 = arith.constant dense<0.000000e+00> : vector<4x8x8xf32>
    %23 = tpu.matmul %22, %19, %cst_9 {dimension_numbers = #tpu.dot_dimension_numbers<[2], [1], [1], [2], [0, 0, 0, 1, 1, 2], [0], [0]>} : vector<4x8x8xf32>, vector<4x8x8xf32>, vector<4x8x8xf32> -> vector<4x8x8xf32>
    "tpu.trace_stop"() : () -> ()
    %24 = vector.shape_cast %14 : vector<8x8xf32> to vector<1x8x8xf32>
    %25 = vector.broadcast %24 : vector<1x8x8xf32> to vector<4x8x8xf32>
    %26 = arith.addf %23, %25 : vector<4x8x8xf32>
    %cst_10 = arith.constant dense<0xFF800000> : vector<4x8xf32>
    %27 = vector.multi_reduction <maximumf>, %26, %cst_10 [2] : vector<4x8x8xf32> to vector<4x8xf32>
    %28 = vector.shape_cast %27 : vector<4x8xf32> to vector<4x8x1xf32>
    %29 = vector.broadcast %28 : vector<4x8x1xf32> to vector<4x8x8xf32>
    %30 = arith.subf %26, %29 : vector<4x8x8xf32>
    %31 = math.exp %30 : vector<4x8x8xf32>
    %cst_11 = arith.constant dense<0.000000e+00> : vector<4x8xf32>
    %32 = vector.multi_reduction <add>, %31, %cst_11 [2] : vector<4x8x8xf32> to vector<4x8xf32>
    %33 = vector.shape_cast %32 : vector<4x8xf32> to vector<4x8x1xf32>
    %cst_12 = arith.constant 0xCCA8965F : f32
    %34 = vector.broadcast %cst_12 : f32 to vector<4x8x1xf32>
    %35 = arith.cmpf ogt, %28, %34 : vector<4x8x1xf32>
    %36 = arith.extui %35 : vector<4x8x1xi1> to vector<4x8x1xi32>
    %37 = arith.sitofp %36 : vector<4x8x1xi32> to vector<4x8x1xf32>
    %38 = tpu.reciprocal %33 {approx = true} : vector<4x8x1xf32> -> vector<4x8x1xf32>
    %39 = arith.mulf %38, %37 : vector<4x8x1xf32>
    %40 = vector.broadcast %39 : vector<4x8x1xf32> to vector<4x8x8xf32>
    %41 = arith.mulf %31, %40 : vector<4x8x8xf32>
    "tpu.trace_start"() <{level = 10 : i32, message = "ndk,nqk->ndq"}> : () -> ()
    %cst_13 = arith.constant dense<0.000000e+00> : vector<4x8x8xf32>
    %42 = tpu.matmul %21, %41, %cst_13 {dimension_numbers = #tpu.dot_dimension_numbers<[2], [2], [1], [1], [0, 0, 0, 1, 1, 1], [0], [0]>} : vector<4x8x8xf32>, vector<4x8x8xf32>, vector<4x8x8xf32> -> vector<4x8x8xf32>
    "tpu.trace_stop"() : () -> ()
    %43 = vector.shape_cast %42 : vector<4x8x8xf32> to vector<32x8xf32>
    %44 = tpu.transpose %43, [1, 0] : vector<32x8xf32> -> vector<8x32xf32>
    %c0_14 = arith.constant 0 : index
    %c0_15 = arith.constant 0 : index
    %45 = vector.load %arg4[%c0_14, %c0_15] : memref<32x32xf32, #tpu.memory_space<vmem>>, vector<32x32xf32>
    %cst_16 = arith.constant dense<0.000000e+00> : vector<8x32xf32>
    %46 = tpu.matmul %44, %45, %cst_16 {dimension_numbers = #tpu.dot_dimension_numbers<[1], [0], [0], [1], [0, 0, 1, 1], [], []>} : vector<8x32xf32>, vector<32x32xf32>, vector<8x32xf32> -> vector<8x32xf32>
    %c0_17 = arith.constant 0 : index
    %c0_18 = arith.constant 0 : index
    %47 = vector.load %arg5[%c0_17, %c0_18] : memref<1x32xf32, #tpu.memory_space<vmem>>, vector<1x32xf32>
    %48 = vector.broadcast %47 : vector<1x32xf32> to vector<8x32xf32>
    %49 = arith.addf %46, %48 : vector<8x32xf32>
    %50 = arith.addf %1, %49 : vector<8x32xf32>
    %c0_19 = arith.constant 0 : index
    %c0_20 = arith.constant 0 : index
    %51 = vector.load %arg6[%c0_19, %c0_20] : memref<1x32xf32, #tpu.memory_space<vmem>>, vector<1x32xf32>
    %c0_21 = arith.constant 0 : index
    %c0_22 = arith.constant 0 : index
    %52 = vector.load %arg7[%c0_21, %c0_22] : memref<1x32xf32, #tpu.memory_space<vmem>>, vector<1x32xf32>
    %cst_23 = arith.constant dense<0.000000e+00> : vector<8xf32>
    %53 = vector.multi_reduction <add>, %50, %cst_23 [1] : vector<8x32xf32> to vector<8xf32>
    %54 = vector.shape_cast %53 : vector<8xf32> to vector<8x1xf32>
    %cst_24 = arith.constant 3.200000e+01 : f32
    %55 = vector.broadcast %cst_24 : f32 to vector<8x1xf32>
    %56 = arith.divf %54, %55 : vector<8x1xf32>
    %57 = vector.broadcast %56 : vector<8x1xf32> to vector<8x32xf32>
    %58 = arith.subf %50, %57 : vector<8x32xf32>
    %59 = arith.mulf %58, %58 : vector<8x32xf32>
    %cst_25 = arith.constant dense<0.000000e+00> : vector<8xf32>
    %60 = vector.multi_reduction <add>, %59, %cst_25 [1] : vector<8x32xf32> to vector<8xf32>
    %61 = vector.shape_cast %60 : vector<8xf32> to vector<8x1xf32>
    %cst_26 = arith.constant 3.200000e+01 : f32
    %62 = vector.broadcast %cst_26 : f32 to vector<8x1xf32>
    %63 = arith.divf %61, %62 : vector<8x1xf32>
    %64 = vector.broadcast %56 : vector<8x1xf32> to vector<8x32xf32>
    %65 = arith.subf %50, %64 : vector<8x32xf32>
    %cst_27 = arith.constant 9.99999974E-6 : f32
    %66 = vector.broadcast %cst_27 : f32 to vector<8x1xf32>
    %67 = arith.addf %63, %66 : vector<8x1xf32>
    %68 = math.rsqrt %67 : vector<8x1xf32>
    %69 = vector.broadcast %68 : vector<8x1xf32> to vector<8x32xf32>
    %70 = arith.mulf %65, %69 : vector<8x32xf32>
    %71 = vector.broadcast %51 : vector<1x32xf32> to vector<8x32xf32>
    %72 = arith.mulf %70, %71 : vector<8x32xf32>
    %73 = vector.broadcast %52 : vector<1x32xf32> to vector<8x32xf32>
    %74 = arith.addf %72, %73 : vector<8x32xf32>
    %c0_28 = arith.constant 0 : index
    %c0_29 = arith.constant 0 : index
    %75 = vector.load %arg8[%c0_28, %c0_29] : memref<1x32xf32, #tpu.memory_space<vmem>>, vector<1x32xf32>
    %76 = vector.broadcast %75 : vector<1x32xf32> to vector<8x32xf32>
    %77 = arith.mulf %74, %76 : vector<8x32xf32>
    %cst_30 = arith.constant dense<0.000000e+00> : vector<8xf32>
    %78 = vector.multi_reduction <add>, %77, %cst_30 [1] : vector<8x32xf32> to vector<8xf32>
    %79 = vector.shape_cast %78 : vector<8xf32> to vector<8x1xf32>
    %c0_31 = arith.constant 0 : index
    %c0_32 = arith.constant 0 : index
    %80 = vector.load %arg9[%c0_31, %c0_32] : memref<1x1xf32, #tpu.memory_space<vmem>>, vector<1x1xf32>
    %81 = vector.broadcast %80 : vector<1x1xf32> to vector<8x1xf32>
    %82 = arith.addf %79, %81 : vector<8x1xf32>
    %cst_33 = arith.constant 0.000000e+00 : f32
    %83 = vector.broadcast %cst_33 : f32 to vector<8x1xf32>
    %84 = arith.cmpf oge, %82, %83 : vector<8x1xf32>
    %cst_34 = arith.constant 0.00999999977 : f32
    %85 = vector.broadcast %cst_34 : f32 to vector<8x1xf32>
    %86 = arith.mulf %85, %82 : vector<8x1xf32>
    %87 = arith.select %84, %82, %86 : vector<8x1xi1>, vector<8x1xf32>
    %c0_35 = arith.constant 0 : index
    %c0_36 = arith.constant 0 : index
    %88 = vector.load %arg10[%c0_35, %c0_36] : memref<1x32xf32, #tpu.memory_space<vmem>>, vector<1x32xf32>
    %89 = vector.broadcast %87 : vector<8x1xf32> to vector<8x32xf32>
    %90 = vector.broadcast %88 : vector<1x32xf32> to vector<8x32xf32>
    %91 = arith.mulf %89, %90 : vector<8x32xf32>
    %c0_37 = arith.constant 0 : index
    %c0_38 = arith.constant 0 : index
    %92 = vector.load %arg11[%c0_37, %c0_38] : memref<1x32xf32, #tpu.memory_space<vmem>>, vector<1x32xf32>
    %93 = vector.broadcast %92 : vector<1x32xf32> to vector<8x32xf32>
    %94 = arith.addf %91, %93 : vector<8x32xf32>
    %95 = arith.negf %94 : vector<8x32xf32>
    %96 = math.exp %95 : vector<8x32xf32>
    %cst_39 = arith.constant 1.000000e+00 : f32
    %97 = vector.broadcast %cst_39 : f32 to vector<8x32xf32>
    %98 = arith.addf %97, %96 : vector<8x32xf32>
    %99 = arith.divf %97, %98 : vector<8x32xf32>
    %c0_40 = arith.constant 0 : index
    %c0_41 = arith.constant 0 : index
    %100 = vector.load %arg12[%c0_40, %c0_41] : memref<32x64xf32, #tpu.memory_space<vmem>>, vector<32x64xf32>
    %cst_42 = arith.constant dense<0.000000e+00> : vector<8x64xf32>
    %101 = tpu.matmul %74, %100, %cst_42 {dimension_numbers = #tpu.dot_dimension_numbers<[1], [0], [0], [1], [0, 0, 1, 1], [], []>} : vector<8x32xf32>, vector<32x64xf32>, vector<8x64xf32> -> vector<8x64xf32>
    %c0_43 = arith.constant 0 : index
    %c0_44 = arith.constant 0 : index
    %102 = vector.load %arg13[%c0_43, %c0_44] : memref<1x64xf32, #tpu.memory_space<vmem>>, vector<1x64xf32>
    %103 = vector.broadcast %102 : vector<1x64xf32> to vector<8x64xf32>
    %104 = arith.addf %101, %103 : vector<8x64xf32>
    %cst_45 = arith.constant 0.000000e+00 : f32
    %105 = vector.broadcast %cst_45 : f32 to vector<8x64xf32>
    %106 = arith.cmpf oge, %104, %105 : vector<8x64xf32>
    %cst_46 = arith.constant 0.00999999977 : f32
    %107 = vector.broadcast %cst_46 : f32 to vector<8x64xf32>
    %108 = arith.mulf %107, %104 : vector<8x64xf32>
    %109 = arith.select %106, %104, %108 : vector<8x64xi1>, vector<8x64xf32>
    %c0_47 = arith.constant 0 : index
    %c0_48 = arith.constant 0 : index
    %110 = vector.load %arg14[%c0_47, %c0_48] : memref<64x32xf32, #tpu.memory_space<vmem>>, vector<64x32xf32>
    %cst_49 = arith.constant dense<0.000000e+00> : vector<8x32xf32>
    %111 = tpu.matmul %109, %110, %cst_49 {dimension_numbers = #tpu.dot_dimension_numbers<[1], [0], [0], [1], [0, 0, 1, 1], [], []>} : vector<8x64xf32>, vector<64x32xf32>, vector<8x32xf32> -> vector<8x32xf32>
    %c0_50 = arith.constant 0 : index
    %c0_51 = arith.constant 0 : index
    %112 = vector.load %arg15[%c0_50, %c0_51] : memref<1x32xf32, #tpu.memory_space<vmem>>, vector<1x32xf32>
    %113 = vector.broadcast %112 : vector<1x32xf32> to vector<8x32xf32>
    %114 = arith.addf %111, %113 : vector<8x32xf32>
    %115 = arith.mulf %74, %99 : vector<8x32xf32>
    %cst_52 = arith.constant 1.000000e+00 : f32
    %116 = vector.broadcast %cst_52 : f32 to vector<8x32xf32>
    %117 = arith.subf %116, %99 : vector<8x32xf32>
    %118 = arith.mulf %114, %117 : vector<8x32xf32>
    %119 = arith.addf %115, %118 : vector<8x32xf32>
    %c0_53 = arith.constant 0 : index
    %c0_54 = arith.constant 0 : index
    %120 = vector.load %arg16[%c0_53, %c0_54] : memref<1x32xf32, #tpu.memory_space<vmem>>, vector<1x32xf32>
    %c0_55 = arith.constant 0 : index
    %c0_56 = arith.constant 0 : index
    %121 = vector.load %arg17[%c0_55, %c0_56] : memref<1x32xf32, #tpu.memory_space<vmem>>, vector<1x32xf32>
    %cst_57 = arith.constant dense<0.000000e+00> : vector<8xf32>
    %122 = vector.multi_reduction <add>, %119, %cst_57 [1] : vector<8x32xf32> to vector<8xf32>
    %123 = vector.shape_cast %122 : vector<8xf32> to vector<8x1xf32>
    %cst_58 = arith.constant 3.200000e+01 : f32
    %124 = vector.broadcast %cst_58 : f32 to vector<8x1xf32>
    %125 = arith.divf %123, %124 : vector<8x1xf32>
    %126 = vector.broadcast %125 : vector<8x1xf32> to vector<8x32xf32>
    %127 = arith.subf %119, %126 : vector<8x32xf32>
    %128 = arith.mulf %127, %127 : vector<8x32xf32>
    %cst_59 = arith.constant dense<0.000000e+00> : vector<8xf32>
    %129 = vector.multi_reduction <add>, %128, %cst_59 [1] : vector<8x32xf32> to vector<8xf32>
    %130 = vector.shape_cast %129 : vector<8xf32> to vector<8x1xf32>
    %cst_60 = arith.constant 3.200000e+01 : f32
    %131 = vector.broadcast %cst_60 : f32 to vector<8x1xf32>
    %132 = arith.divf %130, %131 : vector<8x1xf32>
    %133 = vector.broadcast %125 : vector<8x1xf32> to vector<8x32xf32>
    %134 = arith.subf %119, %133 : vector<8x32xf32>
    %cst_61 = arith.constant 9.99999974E-6 : f32
    %135 = vector.broadcast %cst_61 : f32 to vector<8x1xf32>
    %136 = arith.addf %132, %135 : vector<8x1xf32>
    %137 = math.rsqrt %136 : vector<8x1xf32>
    %138 = vector.broadcast %137 : vector<8x1xf32> to vector<8x32xf32>
    %139 = arith.mulf %134, %138 : vector<8x32xf32>
    %140 = vector.broadcast %120 : vector<1x32xf32> to vector<8x32xf32>
    %141 = arith.mulf %139, %140 : vector<8x32xf32>
    %142 = vector.broadcast %121 : vector<1x32xf32> to vector<8x32xf32>
    %143 = arith.addf %141, %142 : vector<8x32xf32>
    %144 = vector.shape_cast %143 : vector<8x32xf32> to vector<1x8x32xf32>
    %c0_62 = arith.constant 0 : index
    %c0_63 = arith.constant 0 : index
    %c0_64 = arith.constant 0 : index
    %145 = vector.load %arg18[%c0_62, %c0_63, %c0_64] : memref<1x8x32xf32, #tpu.memory_space<vmem>>, vector<1x8x32xf32>
    tpu.vector_store %arg18[%c0_62, %c0_63, %c0_64], %144 {strides = array<i32>} : memref<1x8x32xf32, #tpu.memory_space<vmem>>, vector<1x8x32xf32>,
    return
  }
  func.func @transform_0(%arg0: i32) -> (i32, i32, i32) {
    %c0_i32 = arith.constant 0 : i32
    %c0_i32_0 = arith.constant 0 : i32
    %c0_i32_1 = arith.constant 0 : i32
    return %arg0, %c0_i32, %c0_i32_0 : i32, i32, i32
  }
  func.func @transform_1(%arg0: i32) -> (i32, i32) {
    %c0_i32 = arith.constant 0 : i32
    %c0_i32_0 = arith.constant 0 : i32
    %c0_i32_1 = arith.constant 0 : i32
    return %c0_i32, %c0_i32_0 : i32, i32
  }
  func.func @transform_2(%arg0: i32) -> (i32, i32) {
    %c0_i32 = arith.constant 0 : i32
    %c0_i32_0 = arith.constant 0 : i32
    %c0_i32_1 = arith.constant 0 : i32
    return %c0_i32, %c0_i32_0 : i32, i32
  }
  func.func @transform_3(%arg0: i32) -> (i32, i32) {
    %c0_i32 = arith.constant 0 : i32
    %c0_i32_0 = arith.constant 0 : i32
    %c0_i32_1 = arith.constant 0 : i32
    return %c0_i32, %c0_i32_0 : i32, i32
  }
  func.func @transform_4(%arg0: i32) -> (i32, i32) {
    %c0_i32 = arith.constant 0 : i32
    %c0_i32_0 = arith.constant 0 : i32
    %c0_i32_1 = arith.constant 0 : i32
    return %c0_i32, %c0_i32_0 : i32, i32
  }
  func.func @transform_5(%arg0: i32) -> (i32, i32) {
    %c0_i32 = arith.constant 0 : i32
    %c0_i32_0 = arith.constant 0 : i32
    %c0_i32_1 = arith.constant 0 : i32
    return %c0_i32, %c0_i32_0 : i32, i32
  }
  func.func @transform_6(%arg0: i32) -> (i32, i32) {
    %c0_i32 = arith.constant 0 : i32
    %c0_i32_0 = arith.constant 0 : i32
    %c0_i32_1 = arith.constant 0 : i32
    return %c0_i32, %c0_i32_0 : i32, i32
  }
  func.func @transform_7(%arg0: i32) -> (i32, i32) {
    %c0_i32 = arith.constant 0 : i32
    %c0_i32_0 = arith.constant 0 : i32
    %c0_i32_1 = arith.constant 0 : i32
    return %c0_i32, %c0_i32_0 : i32, i32
  }
  func.func @transform_8(%arg0: i32) -> (i32, i32) {
    %c0_i32 = arith.constant 0 : i32
    %c0_i32_0 = arith.constant 0 : i32
    %c0_i32_1 = arith.constant 0 : i32
    return %c0_i32, %c0_i32_0 : i32, i32
  }
  func.func @transform_9(%arg0: i32) -> (i32, i32) {
    %c0_i32 = arith.constant 0 : i32
    %c0_i32_0 = arith.constant 0 : i32
    %c0_i32_1 = arith.constant 0 : i32
    return %c0_i32, %c0_i32_0 : i32, i32
  }
  func.func @transform_10(%arg0: i32) -> (i32, i32) {
    %c0_i32 = arith.constant 0 : i32
    %c0_i32_0 = arith.constant 0 : i32
    %c0_i32_1 = arith.constant 0 : i32
    return %c0_i32, %c0_i32_0 : i32, i32
  }
  func.func @transform_11(%arg0: i32) -> (i32, i32) {
    %c0_i32 = arith.constant 0 : i32
    %c0_i32_0 = arith.constant 0 : i32
    %c0_i32_1 = arith.constant 0 : i32
    return %c0_i32, %c0_i32_0 : i32, i32
  }
  func.func @transform_12(%arg0: i32) -> (i32, i32) {
    %c0_i32 = arith.constant 0 : i32
    %c0_i32_0 = arith.constant 0 : i32
    %c0_i32_1 = arith.constant 0 : i32
    return %c0_i32, %c0_i32_0 : i32, i32
  }
  func.func @transform_13(%arg0: i32) -> (i32, i32) {
    %c0_i32 = arith.constant 0 : i32
    %c0_i32_0 = arith.constant 0 : i32
    %c0_i32_1 = arith.constant 0 : i32
    return %c0_i32, %c0_i32_0 : i32, i32
  }
  func.func @transform_14(%arg0: i32) -> (i32, i32) {
    %c0_i32 = arith.constant 0 : i32
    %c0_i32_0 = arith.constant 0 : i32
    %c0_i32_1 = arith.constant 0 : i32
    return %c0_i32, %c0_i32_0 : i32, i32
  }
  func.func @transform_15(%arg0: i32) -> (i32, i32) {
    %c0_i32 = arith.constant 0 : i32
    %c0_i32_0 = arith.constant 0 : i32
    %c0_i32_1 = arith.constant 0 : i32
    return %c0_i32, %c0_i32_0 : i32, i32
  }
  func.func @transform_16(%arg0: i32) -> (i32, i32) {
    %c0_i32 = arith.constant 0 : i32
    %c0_i32_0 = arith.constant 0 : i32
    %c0_i32_1 = arith.constant 0 : i32
    return %c0_i32, %c0_i32_0 : i32, i32
  }
  func.func @transform_17(%arg0: i32) -> (i32, i32, i32) {
    %c0_i32 = arith.constant 0 : i32
    %c0_i32_0 = arith.constant 0 : i32
    %c0_i32_1 = arith.constant 0 : i32
    return %arg0, %c0_i32, %c0_i32_0 : i32, i32, i32
  }
}

</mosaic_0001>

<bundles_post_ra>
// kernel: tpu_custom_call.1
= control target key start
LH: loop header
LB: loop body
LE: loop exit
PB: predicated region body
PF: predicated region fallthrough
CT: control target
= control target key end

     0   :  { %s2795_s0 = inlined_call_operand.hbm [shape: f32[2,8,32], index: 0, kind: input, shape index: {}]   ;;  %s2796_s1 = inlined_call_operand.vmem [shape: f32[32,96], index: 1, kind: input, shape index: {}]   ;;  %s2797_s2 = inlined_call_operand.vmem [shape: f32[1,96], index: 2, kind: input, shape index: {}]   ;;  %s2798_s3 = inlined_call_operand.vmem [shape: f32[32,32], index: 3, kind: input, shape index: {}]   ;;  %s2799_s4 = inlined_call_operand.vmem [shape: f32[1,32], index: 4, kind: input, shape index: {}]   ;;  %s2800_s5 = inlined_call_operand.vmem [shape: f32[1,32], index: 5, kind: input, shape index: {}]   ;;  %s2801_s6 = inlined_call_operand.vmem [shape: f32[1,32], index: 6, kind: input, shape index: {}]   ;;  %s2802_s7 = inlined_call_operand.vmem [shape: f32[1,32], index: 7, kind: input, shape index: {}]   ;;  %s2803_s8 = inlined_call_operand.<no memory space> [shape: f32[1,1], index: 8, kind: input, shape index: {}]   ;;  %s2804_s9 = inlined_call_operand.vmem [shape: f32[1,32], index: 9, kind: input, shape index: {}]   ;;  %s2805_s10 = inlined_call_operand.vmem [shape: f32[1,32], index: 10, kind: input, shape index: {}]   ;;  %s2806_s11 = inlined_call_operand.vmem [shape: f32[32,64], index: 11, kind: input, shape index: {}]   ;;  %s2807_s12 = inlined_call_operand.vmem [shape: f32[1,64], index: 12, kind: input, shape index: {}]   ;;  %s2808_s13 = inlined_call_operand.vmem [shape: f32[64,32], index: 13, kind: input, shape index: {}]   ;;  %s2809_s14 = inlined_call_operand.vmem [shape: f32[1,32], index: 14, kind: input, shape index: {}]   ;;  %s2810_s15 = inlined_call_operand.vmem [shape: f32[1,32], index: 15, kind: input, shape index: {}]   ;;  %s2811_s16 = inlined_call_operand.vmem [shape: f32[1,32], index: 16, kind: input, shape index: {}]   ;;  %s2812_s17 = inlined_call_operand.hbm [shape: f32[2,8,32], index: 17, kind: output, shape index: {}]  }
   0x1   :  { %2822 = sst [smem:[#allocation13_spill]] %s2795_s0  ;;  %v22_v0 = vstv %s2803_s8 }
   0x2   :  { %2823 = sst [smem:[#allocation14_spill]] %s2796_s1  ;;  %23 = vst [vmem:[#allocation2] sm:$0x1] %v22_v0 }
   0x3   :  { %2824 = sst [smem:[#allocation15_spill]] %s2797_s2 }
   0x4   :  { %2825 = sst [smem:[#allocation16_spill]] %s2798_s3 }
   0x5   :  { %2826 = sst [smem:[#allocation17_spill]] %s2811_s16 }
   0x6   :  { %2827 = sst [smem:[#allocation18_spill]] %s2812_s17 }
   0x7   :  { %24 = vsyncpa [#allocation4], 0 }
   0x8   :  { %26 = vsyncpa [#allocation4 + $0x1], 0 }
   0x9   :  { %27 = vsyncpa [#allocation5], 0 }
   0xa   :  { %29 = vsyncpa [#allocation5 + $0x1], 0  ;;  %s2445_s26 = smov 0   ;;  %s2447_s27 = smov 0  }
   0xb   :  { %s2449_s28 = smov 0   ;;  %s2451_s29 = smov 0  }
   0xc LB: > { %2828 = sst [smem:[#allocation9_spill]] %s2332_s26  ;;  %s2466_s8 = sadd.s32 4294967295, %s2344_s29   ;;  %s2344_s29 = sphi %s2451_s29, %s2849_s29   ;;  %s2340_s28 = sphi %s2449_s28, %s2851_s28   ;;  %s2336_s27 = sphi %s2447_s27, %s2853_s27   ;;  %s2332_s26 = sphi %s2445_s26, %s2852_s26  }
   0xd   : > { %2829 = sst [smem:[#allocation10_spill]] %s2340_s28  ;;  %s1966_s0 = sadd.s32 4294967294, %s2344_s29  }
   0xe   : > { %s2470_s30 = sadd.s32 1, %s2344_s29   ;;  %s42_s18 = sadd.s32 1, %s2340_s28 }
   0xf   : > { %2830 = sst [smem:[#allocation11_spill]] %s2470_s30  ;;  %s39_s19 = ssub.s32 %s2344_s29, %s2470_s30 }
  0x10   : > { %p49_p0 = scmp.ne.s32.totalorder %s2340_s28, %s2336_s27  ;;  %p40_p1 = scmp.eq.s32.totalorder %s39_s19, 0 }
  0x11   : > { %p50_p2 = scmp.eq.s32.totalorder %s2344_s29, 0  ;;  %p55_p3 = scmp.ne.s32.totalorder %s2336_s27, %s2332_s26 }
  0x12   : > { %p56_p4 = scmp.eq.s32.totalorder %s2466_s8, 0  ;;  %p415_p7 = scmp.eq.s32.totalorder %s2466_s8, 1 }
  0x13   : > { %s2482_s1 = scalar_select %p40_p1, %s2340_s28, %s42_s18  }
  0x14   : > { %p2484_p5 = por %p50_p2, %p49_p0  ;;  %p2488_p6 = por %p56_p4, %p55_p3 }
  0x15   : > { %2831 = sst [smem:[#allocation12_spill]] %s2482_s1  ;;  %p421_p8 = scmp.eq.s32.totalorder %s1966_s0, 1 }
  0x16   : > { %p2185_p10 = scmp.lt.s32.totalorder %s2344_s29, 2  ;;  %p2495_p11 = por %p415_p7, %p49_p0 }
  0x17   : > { %p2499_p12 = por %p421_p8, %p55_p3  ;;  %s489_s24 = sand.u32 1, %s2340_s28  }
  0x18   : > { %s2834_s22 = scalar_select %p2495_p11, 1, 0 }
  0x19   : > { %s2835_s23 = scalar_select %p2499_p12, 1, 0 }
  0x1a   : > { %s1970_s25 = sshll.u32 %s2344_s29, 7  ;;  %s1969_s18 = sshll.u32 %s489_s24, 3 }
  0x1b   : > { %s2836_s30 = sld [smem:[#allocation13_spill]]  ;;  %s493_s0 = scalar_lea.vmem [#allocation3], %s1969_s18 }
  0x1c   : > { %s500_s17 = sshll.u32 %s493_s0, 4  ;;  %p2512_p13 = pnand %p2185_p10, %p2484_p5  ;;  %s2516_s17 = int_to_ptr.vmem [resolvable:$true] %s500_s17 }
  0x1d   : > { %s490_s1 = scalar_lea.sflag [#allocation4], %s489_s24 }
  0x1e   : > { %p2250_p3 = pneg %p2512_p13 }
  0x21   : > { %s2508_s26 = scalar_lea.hbm %s2836_s30, %s1970_s25  ;;  %s2253_s19 = scalar_lea.hbm %s2836_s30, 256 }
  0x22   : > { %s2248_s25 = scalar_lea.hbm %s2508_s26, 128  ;;  %p2254_p5 = scmp.lt.u32.totalorder %s2508_s26, %s2836_s30 }
  0x23   : > { %p2249_p2 = scmp.ne.s32.totalorder %s2508_s26, %s2248_s25  ;;  %p2255_p8 = scmp.lt.u32.totalorder %s2253_s19, %s2248_s25 }
  0x24   : > { %p2257_p9 = scmp.lt.u32.totalorder %s2248_s25, %s2508_s26 }
  0x25   : > { %p2251_p4 = pnand %p2250_p3, %p2249_p2  ;;  %p2256_p10 = por %p2255_p8, %p2254_p5 }
  0x27   : > { %p2252_p7 = pneg %p2251_p4  ;;  %p2258_p0 = por %p2257_p9, %p2256_p10 }
  0x29   : > { %p2259_p1 = pnand %p2258_p0, %p2252_p7 }
  0x2b   : > { %2262 = shalt.err (!%p2259_p1)
}
  0x2c   : > { %s2263_s24 = scalar_lea.vmem %s2516_s17, 128  ;;  %s2346_s20 = smov [#allocation3]  }
  0x2d   : > { %p2264_p2 = scmp.ne.s32.totalorder %s2516_s17, %s2263_s24  ;;  %s2268_s18 = sshll.u32 %s2346_s20, 4  ;;  %s2269_s18 = int_to_ptr.vmem [resolvable:$false] %s2268_s18 }
  0x2e   : > { %s2270_s28 = scalar_lea.vmem %s2269_s18, 256  ;;  %p2271_p11 = scmp.lt.s32.totalorder %s2516_s17, %s2269_s18 }
  0x2f   : > { %p2266_p4 = pnand %p2264_p2, %p2250_p3  ;;  %p2272_p5 = scmp.lt.s32.totalorder %s2270_s28, %s2263_s24 }
  0x31   : > { %p2267_p12 = pneg %p2266_p4  ;;  %p2273_p8 = por %p2272_p5, %p2271_p11 }
  0x33   : > { %p2274_p9 = pnand %p2273_p8, %p2267_p12 }
  0x35   : > { %2277 = shalt.err (!%p2274_p9)
}
  0x36   : > { %2180 = dma.hbm_to_vmem [thread:$0]  (!%p2512_p13), %s2508_s26, 128, %s2516_s17, %s490_s1  }
  0x37   : > { %p2838_p0 = scmp.lt.s32.totalorder %s2344_s29, 3  ;;  %p2839_p1 = scmp.ge.s32.totalorder %s2344_s29, 1 }
  0x39   : > { %p506_p3 = pnand %p2839_p1, %p2838_p0 }
  0x3a   : > { %s2550_s25 = sand.u32 (!%p506_p3), 1, %s2336_s27  }
  0x3b   : > { %509 = sbr.rel (%p506_p3) target bundleno = 2720 (0xaa0), region = 88  ;;  %s1972_s19 = sshll.u32 (!%p506_p3), %s2550_s25, 3 }
  0x3c   : > { %s512_s0 = scalar_lea.sflag (!%p506_p3), [#allocation4], %s2550_s25  ;;  %s515_s16 = scalar_lea.vmem (!%p506_p3), [#allocation3], %s1972_s19 }
  0x42   : > { %2323 = dma.done.wait (%p2488_p6), %s512_s0, 128  }
  0x43   : > { %2325 = vsyncadd (%p2488_p6), %s512_s0, 4294967168  ;;  %v2347_v1 = vmov 0.0|0.0   ;;  %vm2348_vm0 = vmmov 0   ;;  %v2349_v2 = vmov 0.0   ;;  %s2840_s1 = sld [smem:[#allocation14_spill]]  ;;  %v2579_v9 = vld [vmem:[%s515_s16] sm:$0xff]  ;;  %v652_v30 = vlaneseq }
  0x44   : > { %2143 = vmatprep.subr.bf16.mxu0 %v2347_v1  ;;  %2059 = vmatprep.mubr.msk.f32.mxu0 %vm2348_vm0, %v2349_v2  ;;  %vm578_vm1 = vcmask 261120   ;;  %s2841_s2 = sld [smem:[#allocation15_spill]]  ;;  %vm819_vm2 = vcmask 64512   ;;  %s2842_s3 = sld [smem:[#allocation16_spill]]  ;;  %vm1774_vm10 = vcmask 523264  }
  0x45   : > { %2062 = vmatprep.subr.mxu1 %v2349_v2  ;;  %2064 = vmatprep.mubr.msk.f32.mxu1 %vm2348_vm0, %v2349_v2  ;;  %v653_v31 = vshrl.u32 %v652_v30, 7  ;;  %v655_v32 = vand.u32 127, %v652_v30  ;;  %s2843_s17 = sld [smem:[#allocation17_spill]]  ;;  %s2008_s26 = sshll.u32 %s2466_s8, 7 }
  0x46   : > { %s565_s16 = scalar_lea.vmem [#allocation6], %s1972_s19  ;;  %s1883_s20 = scalar_lea.sflag [#allocation5], %s2550_s25 }
  0x47   : > { %vm656_vm3 = vcmp.gt.s32.totalorder %v655_v32, %v653_v31  ;;  %s1896_s24 = sshll.u32 %s565_s16, 4  ;;  %p2845_p11 = scmp.ne.s32.totalorder %s2834_s22, 0  ;;  %s2752_s24 = int_to_ptr.vmem [resolvable:$true] %s1896_s24 }
  0x48   : > { %v657_v33 = vsel %vm656_vm3, 1.7677669e+08, %v2349_v2  ;;  %s2278_s18 = scalar_lea.vmem %s2752_s24, 128  ;;  %s2351_s8 = smov [#allocation6]  }
  0x49   : > { %v567_v3 = vld [vmem:[%s2840_s1] sm:$0xff]  ;;  %v568_v4 = vld [vmem:[%s2840_s1 + $0x8] sm:$0xff]  ;;  %v569_v5 = vld [vmem:[%s2840_s1 + $0x10] sm:$0xff]  ;;  %v658_v34 = vsub.f32 0.0, %v657_v33  ;;  %p2279_p6 = scmp.ne.s32.totalorder %s2752_s24, %s2278_s18  ;;  %s2282_s19 = sshll.u32 %s2351_s8, 4  ;;  %s2283_s19 = int_to_ptr.vmem [resolvable:$false] %s2282_s19 }
  0x4a   : > { %v2144_v6 = vpack.c.bf16 %v568_v4, %v567_v3  ;;  %v570_v7 = vld [vmem:[%s2840_s1 + $0x18] sm:$0xff]  ;;  %v1974_v10 = vld [vmem:[%s2841_s2] ss:$0 sm:$0xff]  ;;  %v1510_v33 = vld [vmem:[%s2842_s3 + $0x10] sm:$0xff]  ;;  %s2844_s2 = sld [smem:[#allocation18_spill]]  ;;  %s2284_s28 = scalar_lea.vmem %s2283_s19, 256 }
  0x4b   : > { %v2147_v8 = vpack.c.bf16 %v570_v7, %v569_v5  ;;  %p2280_p12 = pnand %p2279_p6, %p2845_p11  ;;  %p2285_p7 = scmp.lt.s32.totalorder %s2752_s24, %s2283_s19 }
  0x4c   : > { %2145 = vmatpush3.bf16.msra.mxu0 %v2144_v6  ;;  %p2286_p10 = scmp.lt.s32.totalorder %s2284_s28, %s2278_s18 }
  0x4d   : > { %2146 = vmatprep.subr.bf16.mxu0 %v2347_v1  ;;  %p2281_p13 = pneg %p2280_p12 }
  0x4e   : > { %p2287_p2 = por %p2286_p10, %p2285_p7 }
  0x50   : > { %2148 = vmatpush3.bf16.msra.mxu0 %v2147_v8  ;;  %p2288_p4 = pnand %p2287_p2, %p2281_p13 }
  0x51   : > { %2077 = vmatprep.subr.mxu0 %v2349_v2 }
  0x53   : > { %2060 = vmatmul.mubr.msk.f32.vlgmr.msra.gmra.mrb[0].mxu0 %vm578_vm1, %v2579_v9 }
  0x54   : > { %2079 = vmatprep.mubr.msk.f32.mxu0 %vm2348_vm0, %v2349_v2 }
 0x126   : > { %v648_v11 = vpop.f32.mrb[0].mxu0 }
 0x127   : > { %v2061_v12 = vpop.f32.mrb[1].mxu0  ;;  %v649_v13 = vadd.f32 %v1974_v10, %v648_v11 }
 0x129   : > { %659 = vxpose.xlu0.b32.start.end [1/1] (short) (narrow) %v649_v13, 96 }
 0x1a9   : > { %v675_v14 = vpop.trf.xlu0 }
 0x1aa   : > { %691 = vxpose.xlu0.b32.start.end [1/1] (short) (narrow) %v675_v14, 8 }
 0x1ad   : > { %v676_v15 = vpop.trf.xlu0 }
 0x1ae   : > { %723 = vxpose.xlu1.b32.start.end [1/1] (short) (narrow) %v676_v15, 8 }
 0x1b1   : > { %v677_v16 = vpop.trf.xlu0 }
 0x1b2   : > { %755 = vxpose.xlu1.b32.start.end [1/1] (short) (narrow) %v677_v16, 8 }
 0x1b5   : > { %v678_v17 = vpop.trf.xlu0 }
 0x1b6   : > { %787 = vxpose.xlu1.b32.start.end [1/1] (short) (narrow) %v678_v17, 8 }
 0x1b9   : > { %v679_v18 = vpop.trf.xlu0 }
 0x1ba   : > { %2063 = vmatpush3.msra.mxu1 %v679_v18 }
 0x1bb   : > { %2067 = vmatprep.subr.mxu1 %v2349_v2 }
 0x1bd   : > { %v680_v19 = vpop.trf.xlu0 }
 0x1c1   : > { %v681_v20 = vpop.trf.xlu0 }
 0x1c5   : > { %v682_v21 = vpop.trf.xlu0 }
 0x1c6   : > { %2078 = vmatpush3.msra.mxu0 %v682_v21 }
 0x1c7   : > { %2087 = vmatprep.subr.mxu0 %v2349_v2 }
 0x1c9   : > { %v2591_v22 = vpop.trf.xlu0 }
 0x1cd   : > { %v2593_v23 = vpop.trf.xlu0 }
 0x1d1   : > { %v2595_v24 = vpop.trf.xlu0 }
 0x1d5   : > { %v2597_v25 = vpop.trf.xlu0 }
 0x22a   : > { %v707_v26 = vpop.trf.xlu0 }
 0x22b   : > { %2065 = vmatmul.mubr.msk.f32.vlgmr.msra.gmra.mrb[0].mxu1 %vm819_vm2, %v707_v26 }
 0x22c   : > { %2068 = vmatpush3.msra.mxu1 %v680_v19  ;;  %2069 = vmatprep.mubr.msk.f32.mxu1 %vm2348_vm0, %v2349_v2 }
 0x22d   : > { %2072 = vmatprep.subr.mxu1 %v2349_v2 }
 0x22e   : > { %v739_v27 = vpop.trf.xlu1 }
 0x22f   : > { %2070 = vmatmul.mubr.msk.f32.vlgmr.msra.gmra.mrb[2].mxu1 %vm819_vm2, %v739_v27 }
 0x230   : > { %2073 = vmatpush3.msra.mxu1 %v681_v20  ;;  %2074 = vmatprep.mubr.msk.f32.mxu1 %vm2348_vm0, %v2349_v2 }
 0x231   : > { %2082 = vmatprep.subr.mxu1 %v2349_v2 }
 0x232   : > { %v771_v28 = vpop.trf.xlu1 }
 0x233   : > { %2075 = vmatmul.mubr.msk.f32.vlgmr.msra.gmra.mrb[4].mxu1 %vm819_vm2, %v771_v28 }
 0x234   : > { %2084 = vmatprep.mubr.msk.f32.mxu1 %vm2348_vm0, %v2349_v2 }
 0x236   : > { %v803_v29 = vpop.trf.xlu1 }
 0x237   : > { %2080 = vmatmul.mubr.msk.f32.vlgmr.msra.gmra.mrb[2].mxu0 %vm819_vm2, %v803_v29 }
 0x238   : > { %2089 = vmatprep.mubr.msk.f32.mxu0 %vm2348_vm0, %v2349_v2 }
 0x2fe   : > { %v889_v35 = vpop.f32.mrb[0].mxu1 }
 0x2ff   : > { %v890_v36 = vadd.f32 %v889_v35, %v658_v34  ;;  %v2066_v37 = vpop.f32.mrb[1].mxu1 }
 0x301   : > { %v1112_v38 = vsel %vm819_vm2, %v890_v36, -inf }
 0x302   : > { %1113 = vmax.xlane.f32.xlu1 %v1112_v38  ;;  %v962_v39 = vpop.f32.mrb[2].mxu1 }
 0x303   : > { %v963_v40 = vadd.f32 %v962_v39, %v658_v34  ;;  %v2071_v41 = vpop.f32.mrb[3].mxu1 }
 0x305   : > { %v1115_v42 = vsel %vm819_vm2, %v963_v40, -inf }
 0x306   : > { %1116 = vmax.xlane.f32.xlu0 %v1115_v42  ;;  %v1035_v43 = vpop.f32.mrb[4].mxu1 }
 0x307   : > { %v1036_v44 = vadd.f32 %v1035_v43, %v658_v34  ;;  %v2076_v45 = vpop.f32.mrb[5].mxu1 }
 0x308   : > { %v1992_v45 = vld [vmem:[%s2799_s4] ss:$0 sm:$0xff] }
 0x309   : > { %v1118_v46 = vsel %vm819_vm2, %v1036_v44, -inf }
 0x30a   : > { %1119 = vmax.xlane.f32.xlu1 %v1118_v46  ;;  %v1108_v47 = vpop.f32.mrb[2].mxu0 }
 0x30b   : > { %v1109_v48 = vadd.f32 %v1108_v47, %v658_v34  ;;  %v2081_v49 = vpop.f32.mrb[3].mxu0 }
 0x30d   : > { %v1121_v50 = vsel %vm819_vm2, %v1109_v48, -inf }
 0x30e   : > { %1122 = vmax.xlane.f32.xlu1 %v1121_v50 }
 0x38f   : > { %v1114_v51 = vpop.xlane.xlu1 %1113 }
 0x390   : > { %v1124_v52 = vsub.f32 %v890_v36, %v1114_v51  ;;  %vm1148_vm4 = vcmp.gt.f32.partialorder %v1114_v51, -88388344.0 }
 0x391   : > { %v1980_v14 = vsel %vm1148_vm4, 1.0, %v2349_v2 }
 0x392   : > { %v1128_v53 = vmul.f32 1.442695, %v1124_v52 }
 0x393   : > { %v1117_v54 = vpop.xlane.xlu0 %1116 }
 0x394   : > { %2224 = vpow2.f32 %v1128_v53  ;;  %v1125_v55 = vsub.f32 %v963_v40, %v1117_v54  ;;  %vm1149_vm5 = vcmp.gt.f32.partialorder %v1117_v54, -88388344.0 }
 0x395   : > { %v1981_v19 = vsel %vm1149_vm5, 1.0, %v2349_v2 }
 0x396   : > { %v1130_v56 = vmul.f32 1.442695, %v1125_v55 }
 0x397   : > { %v1120_v57 = vpop.xlane.xlu1 %1119 }
 0x398   : > { %2226 = vpow2.f32 %v1130_v56  ;;  %v1126_v58 = vsub.f32 %v1036_v44, %v1120_v57  ;;  %vm1150_vm6 = vcmp.gt.f32.partialorder %v1120_v57, -88388344.0  ;;  %v1673_v56 = vld [vmem:[%s2806_s11 + $0x8] sm:$0xff] }
 0x399   : > { %v1982_v27 = vsel %vm1150_vm6, 1.0, %v2349_v2 }
 0x39a   : > { %v1132_v59 = vmul.f32 1.442695, %v1126_v58  ;;  %v1675_v58 = vld [vmem:[%s2806_s11 + $0x18] sm:$0xff] }
 0x39b   : > { %v1123_v60 = vpop.xlane.xlu1 %1122 }
 0x39c   : > { %2228 = vpow2.f32 %v1132_v59  ;;  %v1127_v61 = vsub.f32 %v1109_v48, %v1123_v60  ;;  %vm1151_vm7 = vcmp.gt.f32.partialorder %v1123_v60, -88388344.0 }
 0x39d   : > { %v1983_v31 = vsel %vm1151_vm7, 1.0, %v2349_v2 }
 0x39e   : > { %v2225_v62 = vpop.eup %2224  ;;  %v1134_v63 = vmul.f32 1.442695, %v1127_v61 }
 0x39f   : > { %v1136_v0 = vsel %vm819_vm2, %v2225_v62, 0.0 }
 0x3a0   : > { %2230 = vpow2.f32 %v1134_v63  ;;  %1137 = vadd.xlane.f32.xlu1 %v1136_v0  ;;  %v1994_v0 = vld [vmem:[%s2800_s5] ss:$0 sm:$0xff] }
 0x3a2   : > { %v2227_v3 = vpop.eup %2226 }
 0x3a3   : > { %v1139_v4 = vsel %vm819_vm2, %v2227_v3, 0.0 }
 0x3a4   : > { %1140 = vadd.xlane.f32.xlu1 %v1139_v4  ;;  %v1995_v4 = vld [vmem:[%s2801_s6] ss:$0 sm:$0xff] }
 0x3a6   : > { %v2229_v5 = vpop.eup %2228 }
 0x3a7   : > { %v1142_v6 = vsel %vm819_vm2, %v2229_v5, 0.0 }
 0x3a8   : > { %1143 = vadd.xlane.f32.xlu1 %v1142_v6  ;;  %v1996_v6 = vld [vmem:[%s2802_s7] ss:$0 sm:$0xff] }
 0x3aa   : > { %v2231_v7 = vpop.eup %2230 }
 0x3ab   : > { %v1145_v8 = vsel %vm819_vm2, %v2231_v7, 0.0 }
 0x3ac   : > { %1146 = vadd.xlane.f32.xlu1 %v1145_v8 }
 0x42d   : > { %v1138_v10 = vpop.xlane.xlu1 %1137 }
 0x42e   : > { %2232 = vrcp.f32 %v1138_v10 }
 0x431   : > { %v1141_v11 = vpop.xlane.xlu1 %1140 }
 0x432   : > { %2234 = vrcp.f32 %v1141_v11  ;;  %v2350_v11 = vmov 0  }
 0x433   : > { %2223 = vset.pattern.permute.xlu0 %v2350_v11 }
 0x435   : > { %v1144_v12 = vpop.xlane.xlu1 %1143 }
 0x436   : > { %2236 = vrcp.f32 %v1144_v12  ;;  %v1759_v12 = vld [vmem:[%s2808_s13] sm:$0xff] }
 0x438   : > { %v2233_v13 = vpop.eup %2232 }
 0x439   : > { %v1164_v15 = vmul.f32 %v2233_v13, %v1980_v14  ;;  %v1147_v16 = vpop.xlane.xlu1 %1146  ;;  %v1760_v13 = vld [vmem:[%s2808_s13 + $0x8] sm:$0xff]  ;;  %v1761_v14 = vld [vmem:[%s2808_s13 + $0x10] sm:$0xff] }
 0x43a   : > { %2238 = vrcp.f32 %v1147_v16  ;;  %v1762_v16 = vld [vmem:[%s2808_s13 + $0x18] sm:$0xff] }
 0x43b   : > { %v1168_v17 = vmul.f32 %v2225_v62, %v1164_v15  ;;  %v2162_v15 = vpack.c.bf16 %v1760_v13, %v1759_v12 }
 0x43c   : > { %v2235_v18 = vpop.eup %2234 }
 0x43d   : > { %v1165_v20 = vmul.f32 %v2235_v18, %v1981_v19  ;;  %2083 = vmatpush3.xpose.msk.msra.mxu1 %vm819_vm2, %v1168_v17  ;;  %v2165_v17 = vpack.c.bf16 %v1762_v16, %v1761_v14  ;;  %v1763_v18 = vld [vmem:[%s2808_s13 + $0x20] sm:$0xff]  ;;  %v1764_v19 = vld [vmem:[%s2808_s13 + $0x28] sm:$0xff] }
 0x43e   : > { %2092 = vmatprep.subr.mxu1 %v2349_v2 }
 0x43f   : > { %v1169_v21 = vmul.f32 %v2227_v3, %v1165_v20  ;;  %v2168_v20 = vpack.c.bf16 %v1764_v19, %v1763_v18 }
 0x440   : > { %v2237_v26 = vpop.eup %2236  ;;  %2085 = vmatmul.mubr.msk.f32.vlgmr.msra.gmra.mrb[6].mxu1 %vm819_vm2, %v2591_v22 }
 0x441   : > { %v1166_v28 = vmul.f32 %v2237_v26, %v1982_v27  ;;  %2088 = vmatpush3.xpose.msk.msra.mxu0 %vm819_vm2, %v1169_v21  ;;  %2094 = vmatprep.mubr.msk.f32.mxu1 %vm2348_vm0, %v2349_v2  ;;  %v1765_v21 = vld [vmem:[%s2808_s13 + $0x30] sm:$0xff]  ;;  %v1766_v26 = vld [vmem:[%s2808_s13 + $0x38] sm:$0xff] }
 0x442   : > { %2097 = vmatprep.subr.mxu0 %v2349_v2  ;;  %v2171_v27 = vpack.c.bf16 %v1766_v26, %v1765_v21 }
 0x443   : > { %v1170_v29 = vmul.f32 %v2229_v5, %v1166_v28  ;;  %v1997_v28 = vld [vmem:[#allocation2] ss:$0 sm:$0xff] }
 0x444   : > { %v2239_v30 = vpop.eup %2238  ;;  %2090 = vmatmul.mubr.msk.f32.vlgmr.msra.gmra.mrb[4].mxu0 %vm819_vm2, %v2593_v23  ;;  %v1508_v23 = vld [vmem:[%s2842_s3] sm:$0xff] }
 0x445   : > { %v1167_v32 = vmul.f32 %v2239_v30, %v1983_v31  ;;  %2093 = vmatpush3.xpose.msk.msra.mxu1 %vm819_vm2, %v1170_v29  ;;  %2099 = vmatprep.mubr.msk.f32.mxu0 %vm2348_vm0, %v2349_v2 }
 0x446   : > { %2161 = vmatprep.subr.bf16.mxu1 %v2347_v1 }
 0x447   : > { %v1171_v22 = vmul.f32 %v2231_v7, %v1167_v32 }
 0x448   : > { %2095 = vmatmul.mubr.msk.f32.vlgmr.msra.gmra.mrb[8].mxu1 %vm819_vm2, %v2595_v24  ;;  %v1509_v24 = vld [vmem:[%s2842_s3 + $0x8] sm:$0xff] }
 0x449   : > { %2098 = vmatpush3.xpose.msk.msra.mxu0 %vm819_vm2, %v1171_v22  ;;  %2140 = vmatprep.mubr.msk.f32.mxu1 %vm2348_vm0, %v2349_v2  ;;  %v2150_v34 = vpack.c.bf16 %v1509_v24, %v1508_v23 }
 0x44a   : > { %2149 = vmatprep.subr.bf16.mxu0 %v2347_v1  ;;  %2163 = vmatpush3.bf16.msra.mxu1 %v2162_v15 }
 0x44b   : > { %2164 = vmatprep.subr.bf16.mxu1 %v2347_v1 }
 0x44c   : > { %2100 = vmatmul.mubr.msk.f32.vlgmr.msra.gmra.mrb[6].mxu0 %vm819_vm2, %v2597_v25  ;;  %v1511_v25 = vld [vmem:[%s2842_s3 + $0x18] sm:$0xff]  ;;  %s2750_s3 = scalar_lea.hbm %s2844_s2, %s2008_s26 }
 0x44d   : > { %2110 = vmatprep.mubr.msk.f32.mxu0 %vm2348_vm0, %v2349_v2  ;;  %2151 = vmatpush3.bf16.msra.mxu0 %v2150_v34  ;;  %v2153_v35 = vpack.c.bf16 %v1511_v25, %v1510_v33  ;;  %v1998_v25 = vld [vmem:[%s2804_s9] ss:$0 sm:$0xff] }
 0x44e   : > { %2152 = vmatprep.subr.bf16.mxu0 %v2347_v1  ;;  %2166 = vmatpush3.bf16.msra.mxu1 %v2165_v17 }
 0x44f   : > { %2167 = vmatprep.subr.bf16.mxu1 %v2347_v1 }
 0x451   : > { %2154 = vmatpush3.bf16.msra.mxu0 %v2153_v35 }
 0x452   : > { %2155 = vmatprep.subr.bf16.mxu0 %v2347_v1  ;;  %2169 = vmatpush3.bf16.msra.mxu1 %v2168_v20 }
 0x453   : > { %2170 = vmatprep.subr.bf16.mxu1 %v2347_v1 }
 0x456   : > { %2172 = vmatpush3.bf16.msra.mxu1 %v2171_v27 }
 0x513   : > { %v1244_v36 = vpop.f32.mrb[6].mxu1 }
 0x514   : > { %1476 = vxpose.xlu1.b32.start [1/4] (short) (narrow) %v1244_v36, 8  ;;  %v2086_v37 = vpop.f32.mrb[7].mxu1 }
 0x515   : > { %v1999_v37 = vld [vmem:[%s2805_s10] ss:$0 sm:$0xff] }
 0x517   : > { %v1320_v38 = vpop.f32.mrb[4].mxu0 }
 0x518   : > { %1477 = vxpose.xlu1.b32.cont [2/4] (short) (narrow) %v1320_v38, 8  ;;  %v2091_v39 = vpop.f32.mrb[5].mxu0 }
 0x51b   : > { %v1396_v40 = vpop.f32.mrb[8].mxu1 }
 0x51c   : > { %v2096_v41 = vpop.f32.mrb[9].mxu1  ;;  %1478 = vxpose.xlu1.b32.cont [3/4] (short) (narrow) %v1396_v40, 8 }
 0x51f   : > { %v1472_v42 = vpop.f32.mrb[6].mxu0 }
 0x520   : > { %1479 = vxpose.xlu1.b32.end [4/4] (short) (narrow) %v1472_v42, 8  ;;  %v2101_v43 = vpop.f32.mrb[7].mxu0 }
 0x521   : > { %v2003_v43 = vld [vmem:[%s2809_s14] ss:$0 sm:$0xff] }
 0x594   : > { %v1492_v44 = vpop.trf.xlu1 }
 0x595   : > { %2111 = vmatmul.mubr.msk.f32.vlgmr.msra.gmra.mrb[8].mxu0 %vm578_vm1, %v1492_v44 }
 0x596   : > { %2121 = vmatprep.mubr.msk.f32.mxu0 %vm2348_vm0, %v2349_v2  ;;  %v1672_v2 = vld [vmem:[%s2806_s11] sm:$0xff] }
 0x597   : > { %v2156_v57 = vpack.c.bf16 %v1673_v56, %v1672_v2 }
 0x599   : > { %2157 = vmatpush3.bf16.msra.mxu0 %v2156_v57 }
 0x59a   : > { %2158 = vmatprep.subr.bf16.mxu0 %v2347_v1  ;;  %v2001_v1 = vld [vmem:[%s2807_s12] ss:$0 sm:$0xff] }
 0x668   : > { %v1588_v46 = vpop.f32.mrb[8].mxu0 }
 0x669   : > { %v1589_v47 = vadd.f32 %v1992_v45, %v1588_v46  ;;  %v2112_v48 = vpop.f32.mrb[9].mxu0 }
 0x66b   : > { %v1592_v49 = vadd.f32 %v1589_v47, %v2579_v9  ;;  %v1674_v9 = vld [vmem:[%s2806_s11 + $0x10] sm:$0xff] }
 0x66c   : > { %v2159_v59 = vpack.c.bf16 %v1675_v58, %v1674_v9 }
 0x66d   : > { %v1595_v50 = vsel %vm578_vm1, %v1592_v49, 0.0 }
 0x66e   : > { %1596 = vadd.xlane.f32.xlu0 %v1595_v50  ;;  %2160 = vmatpush3.bf16.msra.mxu0 %v2159_v59  ;;  %v2005_v59 = vld [vmem:[%s2810_s15] ss:$0 sm:$0xff] }
 0x6fb   : > { %v1597_v51 = vpop.xlane.xlu0 %1596 }
 0x6fc   : > { %v1599_v52 = vmul.f32 0.03125, %v1597_v51 }
 0x6fe   : > { %v1600_v53 = vsub.f32 %v1592_v49, %v1599_v52 }
 0x700   : > { %v1601_v54 = vmul.f32 %v1600_v53, %v1600_v53 }
 0x702   : > { %v1602_v55 = vsel %vm578_vm1, %v1601_v54, 0.0 }
 0x703   : > { %1603 = vadd.xlane.f32.xlu0 %v1602_v55 }
 0x790   : > { %v1604_v60 = vpop.xlane.xlu0 %1603 }
 0x791   : > { %v1605_v61 = vmul.f32 0.03125, %v1604_v60 }
 0x793   : > { %v1606_v62 = vadd.f32 1e-05, %v1605_v61  ;;  %v2006_v61 = vld [vmem:[%s2843_s17] ss:$0 sm:$0xff] }
 0x795   : > { %2240 = vrsqrt.f32 %v1606_v62 }
 0x79f   : > { %v2241_v63 = vpop.eup %2240 }
 0x7a0   : > { %v1608_v3 = vmul.f32 %v2241_v63, %v1600_v53 }
 0x7a2   : > { %v1615_v5 = vmul.f32 %v1994_v0, %v1608_v3 }
 0x7a4   : > { %v1622_v7 = vadd.f32 %v1995_v4, %v1615_v5 }
 0x7a6   : > { %2122 = vmatmul.mubr.msk.f32.vlgmr.msra.gmra.mrb[10].mxu0 %vm578_vm1, %v1622_v7  ;;  %v1630_v8 = vmul.f32 %v1996_v6, %v1622_v7 }
 0x7a8   : > { %v1631_v10 = vsel %vm578_vm1, %v1630_v8, 0.0 }
 0x7a9   : > { %1632 = vadd.xlane.f32.xlu0 %v1631_v10 }
 0x836   : > { %v1633_v29 = vpop.xlane.xlu0 %1632 }
 0x837   : > { %v1641_v30 = vadd.f32 %v1997_v28, %v1633_v29 }
 0x839   : > { %v1643_v31 = vmul.f32 0.01, %v1641_v30  ;;  %vm1642_vm8 = vcmp.ge.f32.partialorder %v1641_v30, 0.0 }
 0x83b   : > { %v1644_v32 = vsel %vm1642_vm8, %v1641_v30, %v1643_v31 }
 0x83c   : > { %1648 = vperm.xlu0 %2223, %v1644_v32  }
 0x879   : > { %v1752_v22 = vpop.f32.mrb[10].mxu0 }
 0x87a   : > { %v1753_v23 = vadd.f32 %v2001_v1, %v1752_v22  ;;  %v2123_v24 = vpop.f32.mrb[11].mxu0 }
 0x87c   : > { %vm1756_vm9 = vcmp.ge.f32.partialorder %v1753_v23, 0.0  ;;  %v1757_v33 = vmul.f32 0.01, %v1753_v23 }
 0x87e   : > { %v1758_v34 = vsel %vm1756_vm9, %v1753_v23, %v1757_v33 }
 0x87f   : > { %2141 = vmatmul.mubr.msk.f32.vlgmr.msra.gmra.mrb[10].mxu1 %vm1774_vm10, %v1758_v34 }
 0x8bb   : > { %v1649_v35 = vpop.permute.xlu0 %1648 }
 0x8bc   : > { %v1657_v36 = vmul.f32 %v1998_v25, %v1649_v35 }
 0x8be   : > { %v1665_v38 = vadd.f32 %v1999_v37, %v1657_v36 }
 0x8c0   : > { %v2000_v39 = vmul.f32 -1.442695, %v1665_v38 }
 0x8c2   : > { %2242 = vpow2.f32 %v2000_v39 }
 0x8cc   : > { %v2243_v40 = vpop.eup %2242 }
 0x8cd   : > { %v1669_v41 = vadd.f32 1.0, %v2243_v40 }
 0x8cf   : > { %2244 = vrcp.f32 %v1669_v41 }
 0x8d9   : > { %v2245_v42 = vpop.eup %2244 }
 0x8da   : > { %v1849_v46 = vsub.f32 1.0, %v2245_v42  ;;  %v1848_v49 = vmul.f32 %v2245_v42, %v1622_v7 }
 0x952   : > { %v1844_v44 = vpop.f32.mrb[10].mxu1 }
 0x953   : > { %v1845_v45 = vadd.f32 %v2003_v43, %v1844_v44  ;;  %v2142_v47 = vpop.f32.mrb[11].mxu1 }
 0x955   : > { %v1850_v48 = vmul.f32 %v1849_v46, %v1845_v45 }
 0x957   : > { %v1851_v50 = vadd.f32 %v1850_v48, %v1848_v49 }
 0x959   : > { %v1854_v51 = vsel %vm578_vm1, %v1851_v50, 0.0 }
 0x95a   : > { %1855 = vadd.xlane.f32.xlu1 %v1854_v51 }
 0x9e7   : > { %v1856_v52 = vpop.xlane.xlu1 %1855 }
 0x9e8   : > { %v1857_v53 = vmul.f32 0.03125, %v1856_v52 }
 0x9ea   : > { %v1858_v54 = vsub.f32 %v1851_v50, %v1857_v53 }
 0x9ec   : > { %v1859_v55 = vmul.f32 %v1858_v54, %v1858_v54 }
 0x9ee   : > { %v1860_v2 = vsel %vm578_vm1, %v1859_v55, 0.0 }
 0x9ef   : > { %1861 = vadd.xlane.f32.xlu0 %v1860_v2 }
 0xa7c   : > { %v1862_v56 = vpop.xlane.xlu0 %1861 }
 0xa7d   : > { %v1863_v57 = vmul.f32 0.03125, %v1862_v56 }
 0xa7f   : > { %v1864_v9 = vadd.f32 1e-05, %v1863_v57 }
 0xa81   : > { %2246 = vrsqrt.f32 %v1864_v9 }
 0xa8b   : > { %v2247_v58 = vpop.eup %2246 }
 0xa8c   : > { %v1866_v60 = vmul.f32 %v2247_v58, %v1858_v54 }
 0xa8e   : > { %v1873_v62 = vmul.f32 %v2005_v59, %v1866_v60 }
 0xa90   : > { %v1880_v63 = vadd.f32 %v2006_v61, %v1873_v62 }
 0xa92   : > { %1881 = vst.msk [vmem:[%s565_s16] sm:$0xff] %vm578_vm1, %v1880_v63 }
 0xa93   : > { %2291 = shalt.err (!%p2288_p4)
}
 0xa94   : > { %s2292_s25 = scalar_lea.hbm %s2750_s3, 128  ;;  %s2296_s17 = scalar_lea.hbm %s2844_s2, 256 }
 0xa95   : > { %p2293_p5 = scmp.ne.s32.totalorder %s2750_s3, %s2292_s25  ;;  %p2297_p0 = scmp.lt.u32.totalorder %s2750_s3, %s2844_s2 }
 0xa96   : > { %p2298_p1 = scmp.lt.u32.totalorder %s2296_s17, %s2292_s25  ;;  %p2300_p6 = scmp.lt.u32.totalorder %s2292_s25, %s2750_s3 }
 0xa97   : > { %p2294_p8 = pnand %p2293_p5, %p2845_p11 }
 0xa98   : > { %p2299_p3 = por %p2298_p1, %p2297_p0 }
 0xa99   : > { %p2295_p9 = pneg %p2294_p8 }
 0xa9a   : > { %p2301_p12 = por %p2300_p6, %p2299_p3 }
 0xa9c   : > { %p2302_p13 = pnand %p2301_p12, %p2295_p9 }
 0xa9e   : > { %2305 = shalt.err (!%p2302_p13)
}
 0xa9f   : > { %2175 = dma.vmem_to_hbm [thread:$0]  (%p2845_p11), %s2752_s24, 128, %s2750_s3, %s1883_s20  }
 0xaa0 PF: > { %s2846_s21 = sld [smem:[#allocation9_spill]]  ;;  %p2847_p7 = scmp.ne.s32.totalorder %s2835_s23, 0 }
 0xaa1   : > { %p2848_p10 = scmp.ge.s32.totalorder %s2344_s29, 2 }
 0xaa3   : > { %p2182_p2 = pnand %p2848_p10, %p2847_p7 }
 0xaa6   : > { %s1908_s18 = sand.u32 1, %s2846_s21  }
 0xaa7   : > { %s1909_s8 = scalar_lea.sflag [#allocation5], %s1908_s18 }
 0xaa8   : > { %2327 = dma.done.wait (!%p2182_p2), %s1909_s8, 128  }
 0xaa9   : > { %2329 = vsyncadd (!%p2182_p2), %s1909_s8, 4294967168  ;;  %s2849_s29 = sld [smem:[#allocation11_spill]]  ;;  %s2850_s19 = sld [smem:[#allocation10_spill]] }
 0xaaa   : > { %s2851_s28 = sld [smem:[#allocation12_spill]]  ;;  %s2852_s26 = smov %s2336_s27 }
 0xaaf   : > { %p32_p4 = scmp.ge.s32.totalorder %s2849_s29, 4   ;;  %s2853_s27 = smov %s2850_s19 }
 0xab1   :  { %34 = sbr.rel (!%p32_p4) target bundleno = 12 (0xc), region = 133 }
 0xab8   :  { %1914 = vsyncpa [#allocation4], 1 }
 0xab9   :  { %1916 = vsyncpa [#allocation4 + $0x1], 1 }
 0xaba   :  { %1917 = vsyncpa [#allocation5], 1 }
 0xabb   :  { %1919 = vsyncpa [#allocation5 + $0x1], 1 }

</bundles_post_ra>
